<compile_context>
chip_gen: v6e
topology: v6e:2x2x1
jax: 0.10.0
libtpu: 0.0.40
codegen_flags: <defaults>
</compile_context>

<pallas_src>
from functools import partial

import jax
import jax.numpy as jnp
from jax.experimental import pallas as pl
from jax.experimental.pallas import tpu as pltpu


def _head_kernel(x_ref, w1_ref, b1_ref, w2_ref, b2_ref, w3_ref, b3_ref, o_ref,
                 *, approx_recip):
    # Cast activations to the MXU dtype in-register (no extra HBM pass).
    x = x_ref[...].astype(w1_ref.dtype)

    # Layer 1: Linear + ReLU  (MXU in weight dtype, f32 accumulation)
    h1 = jnp.dot(x, w1_ref[...], preferred_element_type=jnp.float32)
    h1 = jnp.maximum(h1 + b1_ref[...], 0.0)
    # (Dropout: identity at inference)

    # Layer 2: Linear + ReLU
    h2 = jnp.dot(h1.astype(w2_ref.dtype), w2_ref[...],
                 preferred_element_type=jnp.float32)
    h2 = jnp.maximum(h2 + b2_ref[...], 0.0)
    # (Dropout: identity at inference)

    # Layer 3: Linear (4 outputs) + Sigmoid
    h3 = jnp.dot(h2.astype(w3_ref.dtype), w3_ref[...],
                 preferred_element_type=jnp.float32) + b3_ref[...]
    denom = 1.0 + jnp.exp(-h3)
    if approx_recip:
        sig = pl.reciprocal(denom, approx=True)   # EUP slot, otherwise idle
    else:
        sig = 1.0 / denom
    o_ref[...] = sig.astype(o_ref.dtype)


def _round_up(n, m):
    return ((n + m - 1) // m) * m


def _pick_bm(B, max_tile):
    """Pick a batch tile: big (fewer grid steps, wider MXU M), multiple of 8,
    and keep >=2 grid steps for large batches so v7x can split across 2 TCs."""
    max_tile = max(8, (max_tile // 8) * 8)
    if B <= max_tile:
        return B  # single block covering the whole batch (block == full dim is legal)
    return min(max_tile, _round_up(pl.cdiv(B, 2), 8))


def prediction_head(x, params, *, matmul_dtype=jnp.bfloat16, max_tile=256):
    """x: (B, input_dim).  params: dict of w1,b1,w2,b2,w3,b3
    (weights stored transposed, i.e. (in_dim, out_dim))."""
    B, in_dim = x.shape
    hid = params["w1"].shape[1]
    hid2 = params["w2"].shape[1]
    out_dim = params["w3"].shape[1]

    mm_dtype = jnp.dtype(matmul_dtype)
    mm_bytes = mm_dtype.itemsize
    x_bytes = jnp.dtype(x.dtype).itemsize

    # Weights in matmul_dtype (bf16 by default, cast once); biases stay f32.
    w1 = params["w1"].astype(mm_dtype)
    w2 = params["w2"].astype(mm_dtype)
    w3 = params["w3"].astype(mm_dtype)
    b1 = params["b1"].reshape(1, hid).astype(jnp.float32)
    b2 = params["b2"].reshape(1, hid2).astype(jnp.float32)
    b3 = params["b3"].reshape(1, out_dim).astype(jnp.float32)

    bm = _pick_bm(B, max_tile)
    grid = (pl.cdiv(B, bm),)

    # VMEM budget: double-buffered x/out tiles + (double-buffered) resident weights.
    weight_elems = in_dim * hid + hid * hid2 + hid2 * out_dim
    bias_elems = hid + hid2 + out_dim
    vmem_est = (2 * bm * in_dim * x_bytes
                + 2 * bm * out_dim * 4
                + 2 * weight_elems * mm_bytes
                + 2 * bias_elems * 4)
    vmem_limit = int(min(64 << 20, max(32 << 20, 2 * vmem_est)))

    cost = pl.CostEstimate(
        flops=2 * B * (in_dim * hid + hid * hid2 + hid2 * out_dim),
        transcendentals=B * out_dim,
        bytes_accessed=(B * in_dim * x_bytes
                        + weight_elems * mm_bytes
                        + bias_elems * 4
                        + B * out_dim * 4),
    )

    kernel = partial(_head_kernel,
                     approx_recip=(mm_dtype != jnp.dtype(jnp.float32)))

    out = pl.pallas_call(
        kernel,
        out_shape=jax.ShapeDtypeStruct((B, out_dim), jnp.float32),
        grid_spec=pltpu.PrefetchScalarGridSpec(
            num_scalar_prefetch=0,
            grid=grid,
            in_specs=[
                pl.BlockSpec((bm, in_dim), lambda i: (i, 0)),      # x tile
                pl.BlockSpec((in_dim, hid), lambda i: (0, 0)),     # W1 (resident)
                pl.BlockSpec((1, hid), lambda i: (0, 0)),          # b1
                pl.BlockSpec((hid, hid2), lambda i: (0, 0)),       # W2
                pl.BlockSpec((1, hid2), lambda i: (0, 0)),         # b2
                pl.BlockSpec((hid2, out_dim), lambda i: (0, 0)),   # W3
                pl.BlockSpec((1, out_dim), lambda i: (0, 0)),      # b3
            ],
            out_specs=pl.BlockSpec((bm, out_dim), lambda i: (i, 0)),
        ),
        compiler_params=pltpu.CompilerParams(
            dimension_semantics=("parallel",),
            vmem_limit_bytes=vmem_limit,
        ),
        cost_estimate=cost,
    )(x, w1, b1, w2, b2, w3, b3)

    return out


def init_params(key, input_dim, hidden_dim):
    """Deterministic init matching nn.Linear shapes (weights stored transposed)."""
    h2 = hidden_dim // 2
    ks = jax.random.split(key, 6)

    def lin(kw, kb, fan_in, fan_out):
        bound = 1.0 / jnp.sqrt(fan_in)
        w = jax.random.uniform(kw, (fan_in, fan_out), jnp.float32, -bound, bound)
        b = jax.random.uniform(kb, (1, fan_out), jnp.float32, -bound, bound)
        return w, b

    w1, b1 = lin(ks[0], ks[1], input_dim, hidden_dim)
    w2, b2 = lin(ks[2], ks[3], hidden_dim, h2)
    w3, b3 = lin(ks[4], ks[5], h2, 4)
    return dict(w1=w1, b1=b1, w2=w2, b2=b2, w3=w3, b3=b3)


def reference(x, p):
    h1 = jnp.maximum(x @ p["w1"] + p["b1"], 0.0)
    h2 = jnp.maximum(h1 @ p["w2"] + p["b2"], 0.0)
    return jax.nn.sigmoid(h2 @ p["w3"] + p["b3"])


if __name__ == "__main__":
    B, input_dim, hidden_dim = 8, 32, 32
    key = jax.random.PRNGKey(0)
    kx, kp = jax.random.split(key)
    x = jax.random.normal(kx, (B, input_dim), jnp.float32)
    params = init_params(kp, input_dim, hidden_dim)
    ref = reference(x, params)

    # f32 MXU path: tight tolerance.
    bbox_f32 = jax.block_until_ready(prediction_head(x, params, matmul_dtype=jnp.float32))
    assert bbox_f32.shape == (B, 4), bbox_f32.shape
    assert jnp.allclose(bbox_f32, ref, atol=1e-4, rtol=1e-4), "f32 path mismatch"

    # Default bf16 MXU path (f32 accumulation): looser tolerance, fine for a bbox head.
    bbox = jax.block_until_ready(prediction_head(x, params))
    assert bbox.shape == (B, 4), bbox.shape
    assert jnp.allclose(bbox, ref, atol=2e-2, rtol=2e-2), "bf16 path mismatch"

    # Multi-step grid + ragged last block (B % bm != 0) to exercise the pipeline path.
    B2 = 20
    x2 = jax.random.normal(jax.random.PRNGKey(1), (B2, input_dim), jnp.float32)
    ref2 = reference(x2, params)
    bbox2 = jax.block_until_ready(prediction_head(x2, params, max_tile=8))
    assert bbox2.shape == (B2, 4), bbox2.shape
    assert jnp.allclose(bbox2, ref2, atol=2e-2, rtol=2e-2), "ragged-grid mismatch"

    print("KERNEL_OK")
</pallas_src>

<mosaic_0001>
module attributes {stable_mosaic.version = 11 : i64} {
  func.func @_head_kernel(%arg0: i32, %arg1: memref<8x32xf32, #tpu.memory_space<vmem>>, %arg2: memref<32x32xf32, #tpu.memory_space<vmem>>, %arg3: memref<1x32xf32, #tpu.memory_space<vmem>>, %arg4: memref<32x16xf32, #tpu.memory_space<vmem>>, %arg5: memref<1x16xf32, #tpu.memory_space<vmem>>, %arg6: memref<16x4xf32, #tpu.memory_space<vmem>>, %arg7: memref<1x4xf32, #tpu.memory_space<vmem>>, %arg8: memref<8x4xf32, #tpu.memory_space<vmem>>) attributes {dimension_semantics = [#tpu.dimension_semantics<parallel>], iteration_bounds = array<i64: 1>, scalar_prefetch = 0 : i64, scratch_operands = 0 : i64, tpu.core_type = #tpu.core_type<tc>, window_params = [{transform_indices = @transform_0, window_bounds = array<i64: 8, 32>}, {pipeline_mode = #tpu.pipeline_mode<synchronous>, transform_indices = @transform_1, window_bounds = array<i64: 32, 32>}, {pipeline_mode = #tpu.pipeline_mode<synchronous>, transform_indices = @transform_2, window_bounds = array<i64: 1, 32>}, {pipeline_mode = #tpu.pipeline_mode<synchronous>, transform_indices = @transform_3, window_bounds = array<i64: 32, 16>}, {pipeline_mode = #tpu.pipeline_mode<synchronous>, transform_indices = @transform_4, window_bounds = array<i64: 1, 16>}, {pipeline_mode = #tpu.pipeline_mode<synchronous>, transform_indices = @transform_5, window_bounds = array<i64: 16, 4>}, {pipeline_mode = #tpu.pipeline_mode<synchronous>, transform_indices = @transform_6, window_bounds = array<i64: 1, 4>}, {transform_indices = @transform_7, window_bounds = array<i64: 8, 4>}]} {
    %c0 = arith.constant 0 : index
    %c0_0 = arith.constant 0 : index
    %0 = vector.load %arg1[%c0, %c0_0] : memref<8x32xf32, #tpu.memory_space<vmem>>, vector<8x32xf32>
    %c0_1 = arith.constant 0 : index
    %c0_2 = arith.constant 0 : index
    %1 = vector.load %arg2[%c0_1, %c0_2] : memref<32x32xf32, #tpu.memory_space<vmem>>, vector<32x32xf32>
    %cst = arith.constant dense<0.000000e+00> : vector<8x32xf32>
    %2 = tpu.matmul %0, %1, %cst {dimension_numbers = #tpu.dot_dimension_numbers<[1], [0], [0], [1], [0, 0, 1, 1], [], []>} : vector<8x32xf32>, vector<32x32xf32>, vector<8x32xf32> -> vector<8x32xf32>
    %c0_3 = arith.constant 0 : index
    %c0_4 = arith.constant 0 : index
    %3 = vector.load %arg3[%c0_3, %c0_4] : memref<1x32xf32, #tpu.memory_space<vmem>>, vector<1x32xf32>
    %4 = vector.broadcast %3 : vector<1x32xf32> to vector<8x32xf32>
    %5 = arith.addf %2, %4 : vector<8x32xf32>
    %cst_5 = arith.constant 0.000000e+00 : f32
    %6 = vector.broadcast %cst_5 : f32 to vector<8x32xf32>
    %7 = arith.maximumf %5, %6 : vector<8x32xf32>
    %c0_6 = arith.constant 0 : index
    %c0_7 = arith.constant 0 : index
    %8 = vector.load %arg4[%c0_6, %c0_7] : memref<32x16xf32, #tpu.memory_space<vmem>>, vector<32x16xf32>
    %cst_8 = arith.constant dense<0.000000e+00> : vector<8x16xf32>
    %9 = tpu.matmul %7, %8, %cst_8 {dimension_numbers = #tpu.dot_dimension_numbers<[1], [0], [0], [1], [0, 0, 1, 1], [], []>} : vector<8x32xf32>, vector<32x16xf32>, vector<8x16xf32> -> vector<8x16xf32>
    %c0_9 = arith.constant 0 : index
    %c0_10 = arith.constant 0 : index
    %10 = vector.load %arg5[%c0_9, %c0_10] : memref<1x16xf32, #tpu.memory_space<vmem>>, vector<1x16xf32>
    %11 = vector.broadcast %10 : vector<1x16xf32> to vector<8x16xf32>
    %12 = arith.addf %9, %11 : vector<8x16xf32>
    %cst_11 = arith.constant 0.000000e+00 : f32
    %13 = vector.broadcast %cst_11 : f32 to vector<8x16xf32>
    %14 = arith.maximumf %12, %13 : vector<8x16xf32>
    %c0_12 = arith.constant 0 : index
    %c0_13 = arith.constant 0 : index
    %15 = vector.load %arg6[%c0_12, %c0_13] : memref<16x4xf32, #tpu.memory_space<vmem>>, vector<16x4xf32>
    %cst_14 = arith.constant dense<0.000000e+00> : vector<8x4xf32>
    %16 = tpu.matmul %14, %15, %cst_14 {dimension_numbers = #tpu.dot_dimension_numbers<[1], [0], [0], [1], [0, 0, 1, 1], [], []>} : vector<8x16xf32>, vector<16x4xf32>, vector<8x4xf32> -> vector<8x4xf32>
    %c0_15 = arith.constant 0 : index
    %c0_16 = arith.constant 0 : index
    %17 = vector.load %arg7[%c0_15, %c0_16] : memref<1x4xf32, #tpu.memory_space<vmem>>, vector<1x4xf32>
    %18 = vector.broadcast %17 : vector<1x4xf32> to vector<8x4xf32>
    %19 = arith.addf %16, %18 : vector<8x4xf32>
    %cst_17 = arith.constant 0.000000e+00 : f32
    %20 = vector.broadcast %cst_17 : f32 to vector<8x4xf32>
    %21 = arith.subf %20, %19 : vector<8x4xf32>
    %22 = math.exp %21 : vector<8x4xf32>
    %cst_18 = arith.constant 1.000000e+00 : f32
    %23 = vector.broadcast %cst_18 : f32 to vector<8x4xf32>
    %24 = arith.addf %23, %22 : vector<8x4xf32>
    %cst_19 = arith.constant 1.000000e+00 : f32
    %25 = vector.broadcast %cst_19 : f32 to vector<8x4xf32>
    %26 = arith.divf %25, %24 : vector<8x4xf32>
    %c0_20 = arith.constant 0 : index
    %c0_21 = arith.constant 0 : index
    %27 = vector.load %arg8[%c0_20, %c0_21] : memref<8x4xf32, #tpu.memory_space<vmem>>, vector<8x4xf32>
    tpu.vector_store %arg8[%c0_20, %c0_21], %26 {strides = array<i32>} : memref<8x4xf32, #tpu.memory_space<vmem>>, vector<8x4xf32>,
    return
  }
  func.func @transform_0(%arg0: i32) -> (i32, i32) {
    %c0_i32 = arith.constant 0 : i32
    %c0_i32_0 = arith.constant 0 : i32
    return %arg0, %c0_i32 : i32, i32
  }
  func.func @transform_1(%arg0: i32) -> (i32, i32) {
    %c0_i32 = arith.constant 0 : i32
    %c0_i32_0 = arith.constant 0 : i32
    %c0_i32_1 = arith.constant 0 : i32
    return %c0_i32, %c0_i32_0 : i32, i32
  }
  func.func @transform_2(%arg0: i32) -> (i32, i32) {
    %c0_i32 = arith.constant 0 : i32
    %c0_i32_0 = arith.constant 0 : i32
    %c0_i32_1 = arith.constant 0 : i32
    return %c0_i32, %c0_i32_0 : i32, i32
  }
  func.func @transform_3(%arg0: i32) -> (i32, i32) {
    %c0_i32 = arith.constant 0 : i32
    %c0_i32_0 = arith.constant 0 : i32
    %c0_i32_1 = arith.constant 0 : i32
    return %c0_i32, %c0_i32_0 : i32, i32
  }
  func.func @transform_4(%arg0: i32) -> (i32, i32) {
    %c0_i32 = arith.constant 0 : i32
    %c0_i32_0 = arith.constant 0 : i32
    %c0_i32_1 = arith.constant 0 : i32
    return %c0_i32, %c0_i32_0 : i32, i32
  }
  func.func @transform_5(%arg0: i32) -> (i32, i32) {
    %c0_i32 = arith.constant 0 : i32
    %c0_i32_0 = arith.constant 0 : i32
    %c0_i32_1 = arith.constant 0 : i32
    return %c0_i32, %c0_i32_0 : i32, i32
  }
  func.func @transform_6(%arg0: i32) -> (i32, i32) {
    %c0_i32 = arith.constant 0 : i32
    %c0_i32_0 = arith.constant 0 : i32
    %c0_i32_1 = arith.constant 0 : i32
    return %c0_i32, %c0_i32_0 : i32, i32
  }
  func.func @transform_7(%arg0: i32) -> (i32, i32) {
    %c0_i32 = arith.constant 0 : i32
    %c0_i32_0 = arith.constant 0 : i32
    return %arg0, %c0_i32 : i32, i32
  }
}

</mosaic_0001>

<bundles_post_ra>
// kernel: tpu_custom_call.1
= control target key start
LH: loop header
LB: loop body
LE: loop exit
PB: predicated region body
PF: predicated region fallthrough
CT: control target
= control target key end

     0   :  { %v347_v0 = vmov 0.0   ;;  %vm348_vm0 = vmmov 0   ;;  %vm38_vm1 = vcmask 261120   ;;  %vm207_vm2 = vcmask 130048   ;;  %s439_s1 = inlined_call_operand.vmem [shape: f32[32,32], index: 1, kind: input, shape index: {}]   ;;  %s440_s3 = inlined_call_operand.vmem [shape: f32[32,16], index: 3, kind: input, shape index: {}]   ;;  %s441_s0 = inlined_call_operand.vmem [shape: f32[8,32], index: 0, kind: input, shape index: {}]   ;;  %s442_s2 = inlined_call_operand.vmem [shape: f32[1,32], index: 2, kind: input, shape index: {}]   ;;  %s443_s5 = inlined_call_operand.vmem [shape: f32[16,4], index: 5, kind: input, shape index: {}]   ;;  %s444_s4 = inlined_call_operand.vmem [shape: f32[1,16], index: 4, kind: input, shape index: {}]   ;;  %s445_s6 = inlined_call_operand.vmem [shape: f32[1,4], index: 6, kind: input, shape index: {}]   ;;  %s446_s7 = inlined_call_operand.vmem [shape: f32[8,4], index: 7, kind: output, shape index: {}]  }
   0x1   :  { %312 = vmatprep.subr.mxu0 %v347_v0  ;;  %v30_v1 = vld [vmem:[%s439_s1 + $0x18] sm:$0xff]  ;;  %v29_v2 = vld [vmem:[%s439_s1 + $0x10] sm:$0xff]  ;;  %320 = vmatprep.mubr.msk.f32.mxu0 %vm348_vm0, %v347_v0  ;;  %v28_v4 = vld [vmem:[%s439_s1 + $0x8] sm:$0xff]  ;;  %vm287_vm3 = vcmask 31744  }
   0x2   :  { %313 = vmatpush3.msra.mxu0 %v30_v1  ;;  %323 = vmatprep.subr.mxu1 %v347_v0  ;;  %v116_v3 = vld [vmem:[%s440_s3 + $0x18] sm:$0xff]  ;;  %v27_v5 = vld [vmem:[%s439_s1] sm:$0xff]  ;;  %v115_v7 = vld [vmem:[%s440_s3 + $0x10] sm:$0xff] }
   0x3   :  { %314 = vmatprep.subr.mxu0 %v347_v0  ;;  %324 = vmatpush3.msra.mxu1 %v116_v3  ;;  %v26_v6 = vld [vmem:[%s441_s0] sm:$0xff]  ;;  %v114_v8 = vld [vmem:[%s440_s3 + $0x8] sm:$0xff] }
   0x4   :  { %315 = vmatpush3.msra.mxu0 %v29_v2  ;;  %325 = vmatprep.subr.mxu1 %v347_v0  ;;  %v113_v9 = vld [vmem:[%s440_s3] sm:$0xff]  ;;  %v199_v15 = vld [vmem:[%s443_s5 + $0x8] sm:$0xff] }
   0x5   :  { %316 = vmatprep.subr.mxu0 %v347_v0  ;;  %331 = vmatprep.mubr.msk.f32.mxu1 %vm348_vm0, %v347_v0  ;;  %v293_v10 = vld [vmem:[%s442_s2] ss:$0 sm:$0xff] }
   0x6   :  { %317 = vmatpush3.msra.mxu0 %v28_v4  ;;  %326 = vmatpush3.msra.mxu1 %v115_v7  ;;  %v198_v16 = vld [vmem:[%s443_s5] sm:$0xff] }
   0x7   :  { %318 = vmatprep.subr.mxu0 %v347_v0  ;;  %327 = vmatprep.subr.mxu1 %v347_v0  ;;  %v295_v17 = vld [vmem:[%s444_s4] ss:$0 sm:$0xff] }
   0x8   :  { %319 = vmatpush3.msra.mxu0 %v27_v5  ;;  %328 = vmatpush3.msra.mxu1 %v114_v8  ;;  %v297_v22 = vld [vmem:[%s445_s6] ss:$0 sm:$0xff] }
   0x9   :  { %321 = vmatmul.mubr.msk.f32.vlgmr.msra.gmra.mxu0 %vm38_vm1, %v26_v6  ;;  %334 = vmatprep.subr.mxu0 %v347_v0 }
   0xa   :  { %338 = vmatprep.mubr.msk.f32.mxu0 %vm348_vm0, %v347_v0  ;;  %329 = vmatprep.subr.mxu1 %v347_v0 }
   0xb   :  { %330 = vmatpush3.msra.mxu1 %v113_v9  ;;  %335 = vmatpush3.msra.mxu0 %v199_v15 }
   0xc   :  { %336 = vmatprep.subr.mxu0 %v347_v0 }
   0xd   :  { %337 = vmatpush3.msra.mxu0 %v198_v16 }
  0xc9   :  { %v108_v11 = vpop.f32.mrf.mxu0 }
  0xca   :  { %v109_v12 = vadd.f32 %v293_v10, %v108_v11 }
  0xcb   :  { %v322_v13 = vpop.f32.mrf.mxu0 }
  0xcc   :  { %v112_v14 = vmax.f32 %v109_v12, 0.0 }
  0xce   :  { %332 = vmatmul.mubr.msk.f32.vlgmr.msra.gmra.mxu1 %vm38_vm1, %v112_v14 }
 0x18e   :  { %v193_v18 = vpop.f32.mrf.mxu1 }
 0x18f   :  { %v194_v19 = vadd.f32 %v295_v17, %v193_v18 }
 0x190   :  { %v333_v20 = vpop.f32.mrf.mxu1 }
 0x191   :  { %v197_v21 = vmax.f32 %v194_v19, 0.0 }
 0x193   :  { %339 = vmatmul.mubr.msk.f32.vlgmr.msra.gmra.mxu0 %vm207_vm2, %v197_v21 }
 0x253   :  { %v277_v23 = vpop.f32.mrf.mxu0 }
 0x254   :  { %v278_v24 = vadd.f32 %v297_v22, %v277_v23 }
 0x255   :  { %v340_v25 = vpop.f32.mrf.mxu0 }
 0x256   :  { %v281_v26 = vsub.f32 0.0, %v278_v24 }
 0x258   :  { %v282_v27 = vmul.f32 1.442695, %v281_v26 }
 0x25a   :  { %343 = vpow2.f32 %v282_v27 }
 0x267   :  { %v344_v28 = vpop.eup %343 }
 0x268   :  { %v284_v29 = vadd.f32 1.0, %v344_v28 }
 0x26a   :  { %345 = vrcp.f32 %v284_v29 }
 0x277   :  { %v346_v30 = vpop.eup %345 }
 0x278   :  { %288 = vst.msk [vmem:[%s446_s7] sm:$0xff] %vm287_vm3, %v346_v30 }

</bundles_post_ra>
